<compile_context>
chip_gen: v6e
topology: v6e:2x2x1
jax: 0.10.0
libtpu: 0.0.40
codegen_flags: <defaults>
</compile_context>

<pallas_src>
import functools
import math

import jax
import jax.numpy as jnp
import numpy as np
from jax import lax
from jax.experimental import pallas as pl
from jax.experimental.pallas import tpu as pltpu

_EPS = 1e-5
_LANE = 128
_SUBLANE = 8


def _round_up(x, m):
    return ((x + m - 1) // m) * m


def _vmem_budget_bytes():
    """Generation-aware scoped-VMEM budget (bytes)."""
    try:
        cap = int(pltpu.get_tpu_info().vmem_capacity_bytes)
    except Exception:   # interpreter / attribute drift -> conservative default
        return 32 * 1024 * 1024
    if cap >= 100 * 1024 * 1024:          # v5e / v6e: 128 MiB physical
        return 64 * 1024 * 1024
    # v7x: 64 MiB physical -> leave headroom for compiler scratch / double buffers
    return min(44 * 1024 * 1024, max(cap // 2, 16 * 1024 * 1024))


def _choose_tiling(n, batch, row_bytes, weight_bytes, budget, user_tile=None):
    """Pick (tile_n, n_pad, n_chunks).

    tile_n is sized so double-buffered (in + out) rows of the widest layer pair fit
    the VMEM budget (256-aligned when auto-chosen, 128-aligned when multi-tile for
    lane legality).  n_chunks=2 splits the spatial axis into two *parallel* grid
    chunks (per-chunk partial stats) so the second v7x TensorCore gets work even
    when the batch axis alone cannot be sharded.
    """
    n8 = _round_up(n, _SUBLANE)
    if user_tile is not None:
        t = int(user_tile)
    else:
        avail = max(budget - 2 * weight_bytes - (2 << 20), 1 << 20)
        t = int(avail // max(2 * row_bytes, 1))
        t = max(256, min(2048, (t // 256) * 256))
    if n8 <= t:
        return n8, n8, 1                      # single tile spans the padded extent
    t = max(_LANE, (t // _LANE) * _LANE)      # lane-dim legality for multi-tile blocks
    n_chunks = 2 if (batch < 2 or batch % 2 == 1) else 1
    n_pad = _round_up(n8, t * n_chunks)
    return t, n_pad, n_chunks


# ----------------------------------------------------------------------------
# Kernels (all values channel-major: (C, tile_n) with C on sublanes, N on lanes)
# ----------------------------------------------------------------------------

def _matmul_stats_kernel(x_ref, w_ref, z_ref, stats_ref):
    """Layer 1: z = W @ x; accumulate per-channel sum / sumsq over the N tiles.

    x_ref:(Cin, tile_n)  w_ref:(Cout, Cin)  z_ref:(Cout, tile_n)
    stats_ref:(Cout, 2) f32 -- resident across the (arbitrary) N-tile axis.
    """
    t = pl.program_id(2)
    z = jnp.dot(w_ref[...], x_ref[...].astype(w_ref.dtype),
                preferred_element_type=jnp.float32)            # (Cout, tile_n)
    zc = z.astype(z_ref.dtype)                                  # what gets stored
    zs = zc.astype(jnp.float32)                                 # stats match stored values

    @pl.when(t == 0)
    def _():
        stats_ref[...] = jnp.zeros_like(stats_ref)

    # single (Cout, 2) RMW instead of two 1-column partial updates
    stats_ref[...] += jnp.concatenate(
        [jnp.sum(zs, axis=1, keepdims=True),
         jnp.sum(zs * zs, axis=1, keepdims=True)], axis=1)
    z_ref[...] = zc


def _norm_relu_matmul_stats_kernel(n_real, tile_n, tpc, n_chunks, mask_cols,
                                   z_ref, stats_in_ref, w_ref,
                                   z_out_ref, stats_out_ref):
    """Fused: normalize+ReLU of layer l, matmul of layer l+1, stats of layer l+1."""
    c = pl.program_id(1)
    t = pl.program_id(2)

    # merge the per-chunk partial stats of the previous layer (n_chunks is static)
    st = stats_in_ref[0]
    for i in range(1, n_chunks):
        st = st + stats_in_ref[i]                               # (Cin, 2) f32
    inv_n = 1.0 / n_real
    mean = st[:, 0:1] * inv_n                                   # (Cin, 1)
    var = jnp.maximum(st[:, 1:2] * inv_n - mean * mean, 0.0)
    a = jnp.maximum((z_ref[...].astype(jnp.float32) - mean) * lax.rsqrt(var + _EPS),
                    0.0)                                        # (Cin, tile_n)
    if mask_cols:
        # zero spatial-padding columns so they don't pollute the next layer's stats.
        # (compare+select is VPU filler in a mem-bound kernel; only compiled in when
        # padding actually exists)
        cols = (c * tpc + t) * tile_n + lax.broadcasted_iota(jnp.int32, a.shape, 1)
        a = jnp.where(cols < n_real, a, 0.0)

    z2 = jnp.dot(w_ref[...], a.astype(w_ref.dtype),
                 preferred_element_type=jnp.float32)            # (Cout, tile_n)
    zc = z2.astype(z_out_ref.dtype)
    zs = zc.astype(jnp.float32)

    @pl.when(t == 0)
    def _():
        stats_out_ref[...] = jnp.zeros_like(stats_out_ref)

    stats_out_ref[...] += jnp.concatenate(
        [jnp.sum(zs, axis=1, keepdims=True),
         jnp.sum(zs * zs, axis=1, keepdims=True)], axis=1)
    z_out_ref[...] = zc


def _norm_relu_kernel(n_real, n_chunks, z_ref, stats_ref, o_ref):
    """Final layer: merge partial stats, normalize + ReLU, store (C, N) directly."""
    st = stats_ref[0]
    for i in range(1, n_chunks):
        st = st + stats_ref[i]
    inv_n = 1.0 / n_real
    mean = st[:, 0:1] * inv_n
    var = jnp.maximum(st[:, 1:2] * inv_n - mean * mean, 0.0)
    zv = z_ref[...].astype(jnp.float32)
    o_ref[...] = jnp.maximum((zv - mean) * lax.rsqrt(var + _EPS), 0.0).astype(o_ref.dtype)


# ----------------------------------------------------------------------------
# pallas_call wrappers
# ----------------------------------------------------------------------------

def _layer_first(x, w, tile_n, n_chunks, storage_dtype, vmem_limit):
    B, Cin, Np = x.shape
    Cout = w.shape[0]
    tpc = Np // (tile_n * n_chunks)
    return pl.pallas_call(
        _matmul_stats_kernel,
        out_shape=(jax.ShapeDtypeStruct((B, Cout, Np), storage_dtype),
                   jax.ShapeDtypeStruct((B * n_chunks, Cout, 2), jnp.float32)),
        grid_spec=pltpu.PrefetchScalarGridSpec(
            num_scalar_prefetch=0,
            grid=(B, n_chunks, tpc),
            in_specs=[
                pl.BlockSpec((pl.Squeezed(), Cin, tile_n),
                             lambda b, c, t: (b, 0, c * tpc + t)),
                pl.BlockSpec((Cout, Cin), lambda b, c, t: (0, 0)),
            ],
            out_specs=[
                pl.BlockSpec((pl.Squeezed(), Cout, tile_n),
                             lambda b, c, t: (b, 0, c * tpc + t)),
                pl.BlockSpec((pl.Squeezed(), Cout, 2),
                             lambda b, c, t: (b * n_chunks + c, 0, 0)),
            ],
        ),
        compiler_params=pltpu.CompilerParams(
            dimension_semantics=("parallel", "parallel", "arbitrary"),
            vmem_limit_bytes=vmem_limit),
    )(x, w)


def _layer_fused(z, stats, w, tile_n, n_chunks, n_real, mask_cols,
                 storage_dtype, vmem_limit):
    B, Cin, Np = z.shape
    Cout = w.shape[0]
    tpc = Np // (tile_n * n_chunks)
    kernel = functools.partial(_norm_relu_matmul_stats_kernel,
                               n_real, tile_n, tpc, n_chunks, mask_cols)
    return pl.pallas_call(
        kernel,
        out_shape=(jax.ShapeDtypeStruct((B, Cout, Np), storage_dtype),
                   jax.ShapeDtypeStruct((B * n_chunks, Cout, 2), jnp.float32)),
        grid_spec=pltpu.PrefetchScalarGridSpec(
            num_scalar_prefetch=0,
            grid=(B, n_chunks, tpc),
            in_specs=[
                pl.BlockSpec((pl.Squeezed(), Cin, tile_n),
                             lambda b, c, t: (b, 0, c * tpc + t)),
                pl.BlockSpec((n_chunks, Cin, 2), lambda b, c, t: (b, 0, 0)),
                pl.BlockSpec((Cout, Cin), lambda b, c, t: (0, 0)),
            ],
            out_specs=[
                pl.BlockSpec((pl.Squeezed(), Cout, tile_n),
                             lambda b, c, t: (b, 0, c * tpc + t)),
                pl.BlockSpec((pl.Squeezed(), Cout, 2),
                             lambda b, c, t: (b * n_chunks + c, 0, 0)),
            ],
        ),
        compiler_params=pltpu.CompilerParams(
            dimension_semantics=("parallel", "parallel", "arbitrary"),
            vmem_limit_bytes=vmem_limit),
    )(z, stats, w)


def _layer_final(z, stats, tile_n, n_chunks, n_real, vmem_limit):
    B, C, Np = z.shape
    nt = Np // tile_n
    kernel = functools.partial(_norm_relu_kernel, n_real, n_chunks)
    return pl.pallas_call(
        kernel,
        out_shape=jax.ShapeDtypeStruct((B, C, Np), jnp.float32),
        grid_spec=pltpu.PrefetchScalarGridSpec(
            num_scalar_prefetch=0,
            grid=(B, nt),
            in_specs=[
                pl.BlockSpec((pl.Squeezed(), C, tile_n), lambda b, n: (b, 0, n)),
                pl.BlockSpec((n_chunks, C, 2), lambda b, n: (b, 0, 0)),
            ],
            out_specs=pl.BlockSpec((pl.Squeezed(), C, tile_n), lambda b, n: (b, 0, n)),
        ),
        compiler_params=pltpu.CompilerParams(
            dimension_semantics=("parallel", "parallel"),
            vmem_limit_bytes=vmem_limit),
    )(z, stats)


# ----------------------------------------------------------------------------
# Module wrapper
# ----------------------------------------------------------------------------

class SharedMLPPallas:
    """JAX/Pallas equivalent of SharedMLP(in_channels, out_channels, dim=1)."""

    def __init__(self, in_channels, out_channels, key,
                 storage_dtype=jnp.bfloat16, tile_n=None):
        if not isinstance(out_channels, (list, tuple)):
            out_channels = [out_channels]
        self.storage_dtype = storage_dtype
        self.tile_n = tile_n
        self.in_channels = in_channels
        self.out_channels = list(out_channels)
        self.weights_raw = []     # f32 (Cout, Cin) -- PyTorch Conv1d weight layout (k=1)
        self.weights = []         # storage-dtype copies used by the kernels (no padding)
        ic = in_channels
        for oc in self.out_channels:
            key, kw = jax.random.split(key)
            bound = 1.0 / math.sqrt(ic)        # kaiming-uniform-like, fan_in = ic * 1
            w = jax.random.uniform(kw, (oc, ic), jnp.float32, -bound, bound)
            self.weights_raw.append(w)
            self.weights.append(w.astype(storage_dtype))
            ic = oc
        # NOTE: Conv1d bias is intentionally omitted -- InstanceNorm1d (affine=False)
        # subtracts the per-(batch, channel) mean over N, so a per-channel bias is
        # cancelled exactly (variance unchanged) and the forward output is identical.

    def _apply(self, x_bcn):
        x = jnp.asarray(x_bcn)
        B, C, N = x.shape
        assert C == self.in_channels
        dtb = jnp.dtype(self.storage_dtype).itemsize
        outs = self.out_channels

        # VMEM-driven tile sizing: widest (in + out) channel pair dominates per-row bytes
        pair_bytes = [C * x.dtype.itemsize + outs[0] * dtb]
        for i in range(1, len(outs)):
            pair_bytes.append((outs[i - 1] + outs[i]) * dtb)
        pair_bytes.append(outs[-1] * (dtb + 4))                 # final normalize kernel
        weight_bytes = max(int(w.size) * dtb for w in self.weights)
        budget = _vmem_budget_bytes()
        tile_n, n_pad, n_chunks = _choose_tiling(
            N, B, max(pair_bytes), weight_bytes, budget, self.tile_n)
        mask_cols = (n_pad != N)

        # Native (B, C, N) layout goes straight into the kernels (no transposes);
        # the spatial axis is zero-padded only when a pad is actually needed.
        x_in = x if n_pad == N else jnp.pad(x, ((0, 0), (0, 0), (0, n_pad - N)))

        # layer 1: conv1x1 matmul + per-(b, chunk, c) sum / sumsq over N
        z, stats = _layer_first(x_in, self.weights[0], tile_n, n_chunks,
                                self.storage_dtype, budget)

        # middle layers: fuse layer l's normalize+ReLU with layer l+1's matmul+stats
        for w in self.weights[1:]:
            z, stats = _layer_fused(z, stats, w, tile_n, n_chunks, N, mask_cols,
                                    self.storage_dtype, budget)

        # final normalize + ReLU (writes (B, Cout, n_pad) f32 directly, lane-dense)
        y = _layer_final(z, stats, tile_n, n_chunks, N, budget)
        return y if n_pad == N else y[:, :, :N]

    def __call__(self, inputs):
        if isinstance(inputs, (list, tuple)):
            return (self._apply(inputs[0]), *inputs[1:])
        return self._apply(inputs)


def _reference(x_bcn, weights_oc):
    """Pure-JAX reference (conv1x1 without bias -> InstanceNorm -> ReLU)."""
    x = x_bcn.astype(jnp.float32)
    for w in weights_oc:                               # (Cout, Cin)
        y = jnp.einsum('oc,bcn->bon', w, x)
        mean = jnp.mean(y, axis=2, keepdims=True)
        var = jnp.mean((y - mean) ** 2, axis=2, keepdims=True)
        x = jnp.maximum((y - mean) * lax.rsqrt(var + _EPS), 0.0)
    return x


if __name__ == "__main__":
    key = jax.random.PRNGKey(0)
    k_in, k_mod, k_extra, k_in2, k_in3 = jax.random.split(key, 5)

    B, C_IN, N = 2, 4, 16
    OUT_CHANNELS = [32, 8]

    x = jax.random.normal(k_in, (B, C_IN, N), jnp.float32)        # PyTorch NCL layout
    extra = jax.random.normal(k_extra, (B, 3, N), jnp.float32)    # passthrough element

    mlp_f32 = SharedMLPPallas(C_IN, OUT_CHANNELS, k_mod, storage_dtype=jnp.float32)
    mlp_bf16 = SharedMLPPallas(C_IN, OUT_CHANNELS, k_mod)         # default bf16 storage

    # tuple input path (forward passes extras through untouched)
    out_tuple = mlp_f32((x, extra))
    y = jax.block_until_ready(out_tuple[0])
    passthrough = out_tuple[1]

    # plain tensor path + bf16-storage / f32-accumulate path
    y2 = jax.block_until_ready(mlp_f32(x))
    y_bf16 = jax.block_until_ready(mlp_bf16(x))

    y_ref = jax.block_until_ready(_reference(x, mlp_f32.weights_raw))
    np.testing.assert_allclose(np.asarray(y), np.asarray(y_ref), rtol=1e-4, atol=1e-4)
    np.testing.assert_allclose(np.asarray(y2), np.asarray(y_ref), rtol=1e-4, atol=1e-4)
    np.testing.assert_allclose(np.asarray(y_bf16), np.asarray(y_ref), rtol=1e-1, atol=1e-1)
    np.testing.assert_allclose(np.asarray(passthrough), np.asarray(extra))
    assert y.shape == (B, OUT_CHANNELS[-1], N)

    # multi-tile + spatial-padding/masking path: N=300 with tile_n forced to 128
    # (3 N-tiles, 84 masked padding positions) -- exercises cross-tile stats accumulation.
    mlp_tiled = SharedMLPPallas(C_IN, OUT_CHANNELS, k_mod,
                                storage_dtype=jnp.float32, tile_n=128)
    x_big = jax.random.normal(k_in2, (B, C_IN, 300), jnp.float32)
    y_big = jax.block_until_ready(mlp_tiled(x_big))
    y_big_ref = jax.block_until_ready(_reference(x_big, mlp_tiled.weights_raw))
    np.testing.assert_allclose(np.asarray(y_big), np.asarray(y_big_ref),
                               rtol=1e-4, atol=1e-4)
    assert y_big.shape == (B, OUT_CHANNELS[-1], 300)

    # B == 1 path: spatial axis split into 2 parallel chunks with partial stats
    # (v7x megacore utilization) -- exercises the chunk merge in kernels B and C.
    x_b1 = jax.random.normal(k_in3, (1, C_IN, 300), jnp.float32)
    y_b1 = jax.block_until_ready(mlp_tiled(x_b1))
    y_b1_ref = jax.block_until_ready(_reference(x_b1, mlp_tiled.weights_raw))
    np.testing.assert_allclose(np.asarray(y_b1), np.asarray(y_b1_ref),
                               rtol=1e-4, atol=1e-4)

    # single-layer MLP: layer 1 is also the last layer (no fused kernel in between)
    mlp_single = SharedMLPPallas(C_IN, 8, k_mod, storage_dtype=jnp.float32)
    y_s = jax.block_until_ready(mlp_single(x))
    y_s_ref = jax.block_until_ready(_reference(x, mlp_single.weights_raw))
    np.testing.assert_allclose(np.asarray(y_s), np.asarray(y_s_ref),
                               rtol=1e-4, atol=1e-4)

    print("KERNEL_OK")
</pallas_src>

<mosaic_0001>
module attributes {stable_mosaic.version = 11 : i64} {
  func.func @_matmul_stats_kernel(%arg0: i32, %arg1: i32, %arg2: i32, %arg3: memref<1x4x16xf32, #tpu.memory_space<vmem>>, %arg4: memref<32x4xf32, #tpu.memory_space<vmem>>, %arg5: memref<1x32x16xf32, #tpu.memory_space<vmem>>, %arg6: memref<1x32x2xf32, #tpu.memory_space<vmem>>) attributes {dimension_semantics = [#tpu.dimension_semantics<parallel>, #tpu.dimension_semantics<parallel>, #tpu.dimension_semantics<arbitrary>], iteration_bounds = array<i64: 2, 1, 1>, scalar_prefetch = 0 : i64, scratch_operands = 0 : i64, tpu.core_type = #tpu.core_type<tc>, window_params = [{transform_indices = @transform_0, window_bounds = array<i64: 1, 4, 16>}, {pipeline_mode = #tpu.pipeline_mode<synchronous>, transform_indices = @transform_1, window_bounds = array<i64: 32, 4>}, {transform_indices = @transform_2, window_bounds = array<i64: 1, 32, 16>}, {transform_indices = @transform_3, window_bounds = array<i64: 1, 32, 2>}]} {
    %c0 = arith.constant 0 : index
    %c0_0 = arith.constant 0 : index
    %0 = vector.load %arg4[%c0, %c0_0] : memref<32x4xf32, #tpu.memory_space<vmem>>, vector<32x4xf32>
    %c0_1 = arith.constant 0 : index
    %c0_2 = arith.constant 0 : index
    %c0_3 = arith.constant 0 : index
    %1 = vector.load %arg3[%c0_1, %c0_2, %c0_3] : memref<1x4x16xf32, #tpu.memory_space<vmem>>, vector<1x4x16xf32>
    %2 = vector.shape_cast %1 : vector<1x4x16xf32> to vector<4x16xf32>
    %cst = arith.constant dense<0.000000e+00> : vector<32x16xf32>
    %3 = tpu.matmul %0, %2, %cst {dimension_numbers = #tpu.dot_dimension_numbers<[1], [0], [0], [1], [0, 0, 1, 1], [], []>} : vector<32x4xf32>, vector<4x16xf32>, vector<32x16xf32> -> vector<32x16xf32>
    %c0_i32 = arith.constant 0 : i32
    %4 = arith.cmpi eq, %arg2, %c0_i32 : i32
    %5 = arith.extui %4 : i1 to i32
    %c0_i32_4 = arith.constant 0 : i32
    %6 = arith.cmpi ne, %5, %c0_i32_4 : i32
    scf.if %6 {
      %cst_16 = arith.constant 0.000000e+00 : f32
      %22 = vector.broadcast %cst_16 : f32 to vector<32x2xf32>
      %c0_17 = arith.constant 0 : index
      %c0_18 = arith.constant 0 : index
      %c0_19 = arith.constant 0 : index
      %23 = vector.load %arg6[%c0_17, %c0_18, %c0_19] : memref<1x32x2xf32, #tpu.memory_space<vmem>>, vector<1x32x2xf32>
      %24 = vector.shape_cast %23 : vector<1x32x2xf32> to vector<32x2xf32>
      %25 = vector.shape_cast %22 : vector<32x2xf32> to vector<1x32x2xf32>
      tpu.vector_store %arg6[%c0_17, %c0_18, %c0_19], %25 {strides = array<i32>} : memref<1x32x2xf32, #tpu.memory_space<vmem>>, vector<1x32x2xf32>,
    } else {
    }
    %c0_5 = arith.constant 0 : index
    %c0_6 = arith.constant 0 : index
    %c0_7 = arith.constant 0 : index
    %7 = vector.load %arg6[%c0_5, %c0_6, %c0_7] : memref<1x32x2xf32, #tpu.memory_space<vmem>>, vector<1x32x2xf32>
    %8 = vector.shape_cast %7 : vector<1x32x2xf32> to vector<32x2xf32>
    %cst_8 = arith.constant dense<0.000000e+00> : vector<32xf32>
    %9 = vector.multi_reduction <add>, %3, %cst_8 [1] : vector<32x16xf32> to vector<32xf32>
    %10 = vector.shape_cast %9 : vector<32xf32> to vector<32x1xf32>
    %11 = arith.mulf %3, %3 : vector<32x16xf32>
    %cst_9 = arith.constant dense<0.000000e+00> : vector<32xf32>
    %12 = vector.multi_reduction <add>, %11, %cst_9 [1] : vector<32x16xf32> to vector<32xf32>
    %13 = vector.shape_cast %12 : vector<32xf32> to vector<32x1xf32>
    %14 = tpu.concatenate %10, %13 in 1 : vector<32x1xf32>, vector<32x1xf32> -> vector<32x2xf32>
    %15 = arith.addf %8, %14 : vector<32x2xf32>
    %c0_10 = arith.constant 0 : index
    %c0_11 = arith.constant 0 : index
    %c0_12 = arith.constant 0 : index
    %16 = vector.load %arg6[%c0_10, %c0_11, %c0_12] : memref<1x32x2xf32, #tpu.memory_space<vmem>>, vector<1x32x2xf32>
    %17 = vector.shape_cast %16 : vector<1x32x2xf32> to vector<32x2xf32>
    %18 = vector.shape_cast %15 : vector<32x2xf32> to vector<1x32x2xf32>
    tpu.vector_store %arg6[%c0_10, %c0_11, %c0_12], %18 {strides = array<i32>} : memref<1x32x2xf32, #tpu.memory_space<vmem>>, vector<1x32x2xf32>,
    %c0_13 = arith.constant 0 : index
    %c0_14 = arith.constant 0 : index
    %c0_15 = arith.constant 0 : index
    %19 = vector.load %arg5[%c0_13, %c0_14, %c0_15] : memref<1x32x16xf32, #tpu.memory_space<vmem>>, vector<1x32x16xf32>
    %20 = vector.shape_cast %19 : vector<1x32x16xf32> to vector<32x16xf32>
    %21 = vector.shape_cast %3 : vector<32x16xf32> to vector<1x32x16xf32>
    tpu.vector_store %arg5[%c0_13, %c0_14, %c0_15], %21 {strides = array<i32>} : memref<1x32x16xf32, #tpu.memory_space<vmem>>, vector<1x32x16xf32>,
    return
  }
  func.func @transform_0(%arg0: i32, %arg1: i32, %arg2: i32) -> (i32, i32, i32) {
    %c1_i32 = arith.constant 1 : i32
    %0 = arith.muli %arg1, %c1_i32 : i32
    %1 = arith.addi %0, %arg2 : i32
    %c0_i32 = arith.constant 0 : i32
    %c0_i32_0 = arith.constant 0 : i32
    return %arg0, %c0_i32, %1 : i32, i32, i32
  }
  func.func @transform_1(%arg0: i32, %arg1: i32, %arg2: i32) -> (i32, i32) {
    %c0_i32 = arith.constant 0 : i32
    %c0_i32_0 = arith.constant 0 : i32
    %c0_i32_1 = arith.constant 0 : i32
    return %c0_i32, %c0_i32_0 : i32, i32
  }
  func.func @transform_2(%arg0: i32, %arg1: i32, %arg2: i32) -> (i32, i32, i32) {
    %c1_i32 = arith.constant 1 : i32
    %0 = arith.muli %arg1, %c1_i32 : i32
    %1 = arith.addi %0, %arg2 : i32
    %c0_i32 = arith.constant 0 : i32
    %c0_i32_0 = arith.constant 0 : i32
    return %arg0, %c0_i32, %1 : i32, i32, i32
  }
  func.func @transform_3(%arg0: i32, %arg1: i32, %arg2: i32) -> (i32, i32, i32) {
    %c1_i32 = arith.constant 1 : i32
    %0 = arith.muli %arg0, %c1_i32 : i32
    %1 = arith.addi %0, %arg1 : i32
    %c0_i32 = arith.constant 0 : i32
    %c0_i32_0 = arith.constant 0 : i32
    %c0_i32_1 = arith.constant 0 : i32
    return %1, %c0_i32, %c0_i32_0 : i32, i32, i32
  }
}

</mosaic_0001>

<bundles_post_ra>
// kernel: tpu_custom_call.1
= control target key start
LH: loop header
LB: loop body
LE: loop exit
PB: predicated region body
PF: predicated region fallthrough
CT: control target
= control target key end

     0   :  { %s630_s12 = smov 0   ;;  %s632_s13 = smov 0   ;;  %s724_s0 = inlined_call_operand.vmem [shape: f32[2,4,16], index: 0, kind: input, shape index: {}]   ;;  %s725_s1 = inlined_call_operand.vmem [shape: f32[32,4], index: 1, kind: input, shape index: {}]   ;;  %s726_s2 = inlined_call_operand.vmem [shape: f32[2,32,16], index: 2, kind: output, shape index: {0}]   ;;  %s727_s3 = inlined_call_operand.vmem [shape: f32[2,32,2], index: 3, kind: output, shape index: {1}]  }
   0x1   :  { %s634_s14 = smov 0  }
   0x2 LB: > { %s33_s15 = sadd.s32 1, %s603_s13  ;;  %p530_p0 = scmp.ge.s32.totalorder %s607_s14, 1  ;;  %s607_s14 = sphi %s634_s14, %s14_s14   ;;  %s603_s13 = sphi %s632_s13, %s729_s13   ;;  %s599_s12 = sphi %s630_s12, %s728_s12  }
   0x3   : > { %p35_p1 = scmp.ge.s32.totalorder %s33_s15, 2  ;;  %p173_p2 = scmp.lt.s32.totalorder %s607_s14, 3 }
   0x5   : > { %s731_s15 = smov (%p35_p1, %s33_s15), 0  ;;  %p174_p3 = pnand %p530_p0, %p173_p2 }
   0x6   : > { %p211_p4 = scmp.lt.s32.totalorder (!%p174_p3), %s599_s12, 1 }
   0x7   : > { %177 = sbr.rel (%p174_p3) target bundleno = 366 (0x16e), region = 28 }
   0xc   : > { %v236_v0 = vld [vmem:[%s725_s1] sm:$0xff]  ;;  %vm241_vm0 = vcmask 31744   ;;  %v238_v1 = vld [vmem:[%s725_s1 + $0x10] sm:$0xff]  ;;  %s733_s12 = smov (!%p211_p4, %s599_s12), 1  ;;  %vm254_vm1 = vcmask 1043456   ;;  %v237_v3 = vld [vmem:[%s725_s1 + $0x8] sm:$0xff] }
   0xd   : > { %552 = vmatprep.mubr.msk.f32.mxu0 %vm241_vm0, %v236_v0  ;;  %555 = vmatprep.mubr.msk.f32.mxu1 %vm241_vm0, %v238_v1  ;;  %s531_s20 = sshll.u32 %s733_s12, 2  ;;  %v239_v4 = vld [vmem:[%s725_s1 + $0x18] sm:$0xff]  ;;  %s543_s28 = sshll.u32 %s733_s12, 5  ;;  %vm356_vm2 = vcmask 130048   ;;  %vm347_vm3 = vcmask 15360   ;;  %v609_v21 = vmov 0.0  }
   0xe   : > { %s217_s23 = scalar_lea.vmem %s724_s0, %s531_s20  ;;  %s227_s4 = scalar_lea.vmem %s726_s2, %s543_s28  ;;  %vm385_vm4 = vcmask 7168  }
   0xf   : > { %v240_v2 = vld [vmem:[%s217_s23] sm:$0xf]  ;;  %s687_s7 = scalar_lea.vmem %s727_s3, %s543_s28 }
  0x10   : > { %550 = vmatprep.subr.msk.mxu0 %vm254_vm1, %v240_v2  ;;  %558 = vmatprep.subr.msk.mxu1 %vm254_vm1, %v240_v2  ;;  %349 = vst.msk [vmem:[%s687_s7 + $0x8] sm:$0xff] %vm347_vm3, %v609_v21  ;;  %348 = vst.msk [vmem:[%s687_s7] sm:$0xff] %vm347_vm3, %v609_v21 }
  0x11   : > { %551 = vmatpush3.msk.msra.mxu0 %vm254_vm1, %v240_v2  ;;  %559 = vmatpush3.msk.msra.mxu1 %vm254_vm1, %v240_v2  ;;  %350 = vst.msk [vmem:[%s687_s7 + $0x10] sm:$0xff] %vm347_vm3, %v609_v21  ;;  %351 = vst.msk [vmem:[%s687_s7 + $0x18] sm:$0xff] %vm347_vm3, %v609_v21 }
  0x12   : > { %553 = vmatmul.mubr.msk.f32.vlgmr.msra.gmra.mxu0 %vm241_vm0, %v237_v3  ;;  %556 = vmatmul.mubr.msk.f32.vlgmr.msra.gmra.mxu1 %vm241_vm0, %v239_v4 }
  0x17   : > { %v353_v26 = vld [vmem:[%s687_s7 + $0x8] sm:$0xff]  ;;  %v352_v27 = vld [vmem:[%s687_s7] sm:$0xff] }
  0x18   : > { %v355_v34 = vld [vmem:[%s687_s7 + $0x18] sm:$0xff]  ;;  %v354_v35 = vld [vmem:[%s687_s7 + $0x10] sm:$0xff] }
  0xd2   : > { %v554_v5 = vpop.f32.mrf.mxu0  ;;  %v557_v6 = vpop.f32.mrf.mxu1 }
  0xd3   : > { %400 = vst.msk [vmem:[%s227_s4 + $0x8] sm:$0xff] %vm356_vm2, %v554_v5  ;;  %402 = vst.msk [vmem:[%s227_s4 + $0x18] sm:$0xff] %vm356_vm2, %v557_v6  ;;  %v366_v7 = vsel %vm356_vm2, %v557_v6, 0.0  ;;  %v360_v8 = vsel %vm356_vm2, %v554_v5, 0.0  ;;  %v370_v14 = vmul.f32 %v554_v5, %v554_v5  ;;  %v372_v18 = vmul.f32 %v557_v6, %v557_v6 }
  0xd4   : > { %367 = vadd.xlane.f32.xlu1 %v366_v7  ;;  %v334_v9 = vpop.f32.mrf.mxu1  ;;  %361 = vadd.xlane.f32.xlu0 %v360_v8  ;;  %v324_v10 = vpop.f32.mrf.mxu0 }
  0xd5   : > { %401 = vst.msk [vmem:[%s227_s4 + $0x10] sm:$0xff] %vm356_vm2, %v334_v9  ;;  %399 = vst.msk [vmem:[%s227_s4] sm:$0xff] %vm356_vm2, %v324_v10  ;;  %v369_v11 = vmul.f32 %v324_v10, %v324_v10  ;;  %v363_v12 = vsel %vm356_vm2, %v334_v9, 0.0  ;;  %v357_v13 = vsel %vm356_vm2, %v324_v10, 0.0  ;;  %v371_v15 = vmul.f32 %v334_v9, %v334_v9 }
  0xd6   : > { %v376_v16 = vsel %vm356_vm2, %v370_v14, 0.0  ;;  %v382_v19 = vsel %vm356_vm2, %v372_v18, 0.0 }
  0xd7   : > { %v373_v17 = vsel %vm356_vm2, %v369_v11, 0.0  ;;  %v379_v20 = vsel %vm356_vm2, %v371_v15, 0.0 }
  0xd8   : > { %364 = vadd.xlane.f32.xlu1 %v363_v12  ;;  %358 = vadd.xlane.f32.xlu0 %v357_v13 }
  0xdc   : > { %377 = vadd.xlane.f32.xlu1 %v376_v16  ;;  %374 = vadd.xlane.f32.xlu0 %v373_v17 }
  0xe0   : > { %383 = vadd.xlane.f32.xlu1 %v382_v19  ;;  %380 = vadd.xlane.f32.xlu0 %v379_v20 }
 0x15d   : > { %v368_v22 = vpop.xlane.xlu1 %367  ;;  %v362_v23 = vpop.xlane.xlu0 %361 }
 0x161   : > { %v365_v24 = vpop.xlane.xlu1 %364  ;;  %v359_v25 = vpop.xlane.xlu0 %358 }
 0x165   : > { %v378_v28 = vpop.xlane.xlu1 %377  ;;  %v375_v29 = vpop.xlane.xlu0 %374 }
 0x166   : > { %v387_v30 = vsel %vm385_vm4, %v362_v23, %v378_v28  ;;  %v386_v31 = vsel %vm385_vm4, %v359_v25, %v375_v29 }
 0x167   : > { %v391_v32 = vadd.f32 %v387_v30, %v353_v26  ;;  %v390_v33 = vadd.f32 %v386_v31, %v352_v27 }
 0x169   : > { %396 = vst.msk [vmem:[%s687_s7 + $0x8] sm:$0xff] %vm347_vm3, %v391_v32  ;;  %395 = vst.msk [vmem:[%s687_s7] sm:$0xff] %vm347_vm3, %v390_v33  ;;  %v384_v36 = vpop.xlane.xlu1 %383  ;;  %v381_v37 = vpop.xlane.xlu0 %380 }
 0x16a   : > { %v389_v38 = vsel %vm385_vm4, %v368_v22, %v384_v36  ;;  %v388_v39 = vsel %vm385_vm4, %v365_v24, %v381_v37 }
 0x16b   : > { %v393_v40 = vadd.f32 %v389_v38, %v355_v34  ;;  %v392_v41 = vadd.f32 %v388_v39, %v354_v35 }
 0x16d   : > { %398 = vst.msk [vmem:[%s687_s7 + $0x18] sm:$0xff] %vm347_vm3, %v393_v40  ;;  %397 = vst.msk [vmem:[%s687_s7 + $0x10] sm:$0xff] %vm347_vm3, %v392_v41 }
 0x16e PF: > { %s14_s14 = sadd.s32 1, %s607_s14   ;;  %s728_s12 = smov %s603_s13 }
 0x16f   : > { %p11_p5 = scmp.ge.s32.totalorder %s14_s14, 4   ;;  %s729_s13 = smov %s731_s15 }
 0x171   :  { %13 = sbr.rel (!%p11_p5) target bundleno = 2 (0x2), region = 74 }

</bundles_post_ra>
